<compile_context>
chip_gen: v7x
topology: tpu7x:2x2x1
jax: 0.10.0
libtpu: 0.0.40
codegen_flags: <defaults>
</compile_context>

<pallas_src>
import functools

import jax
import jax.numpy as jnp
from jax.experimental import pallas as pl
from jax.experimental.pallas import tpu as pltpu

LANE = 128
SUBLANE = 8


def _round_up(x, m):
    return (x + m - 1) // m * m


@functools.lru_cache(maxsize=1)
def _tpu_flavor():
    """Best-effort chip detection (conservative fallbacks)."""
    try:
        kind = jax.devices()[0].device_kind.lower()
    except Exception:  # pragma: no cover
        kind = ""
    num_cores = 2 if "v7" in kind else 1            # v7x: 2 TensorCores / chip
    bf16_vpu = ("v6" in kind) or ("v7" in kind)     # bf16-capable VALU
    return num_cores, bf16_vpu


def _actor_kernel(x_ref, w1_ref, b1_ref, w2_ref, b2_ref, w3_ref, b3_ref, o_ref,
                  *, bf16_relu):
    """Three MXU matmuls (bf16 in, f32 accumulate) + ReLU/ReLU/tanh."""
    bf16 = jnp.bfloat16
    x = x_ref[...]                                                   # already bf16
    h1 = jnp.dot(x, w1_ref[...], preferred_element_type=jnp.float32) + b1_ref[...]
    if bf16_relu:
        # bias add in f32, then downcast (monotonic) so the max runs on packed
        # bf16 vregs — v6e/v7x only.
        h1 = jnp.maximum(h1.astype(bf16), 0.0)
    else:
        h1 = jnp.maximum(h1, 0.0).astype(bf16)                       # f32 VPU (v5e)
    h2 = jnp.dot(h1, w2_ref[...], preferred_element_type=jnp.float32) + b2_ref[...]
    if bf16_relu:
        h2 = jnp.maximum(h2.astype(bf16), 0.0)
    else:
        h2 = jnp.maximum(h2, 0.0).astype(bf16)
    h3 = jnp.dot(h2, w3_ref[...], preferred_element_type=jnp.float32) + b3_ref[...]
    o_ref[...] = jnp.tanh(h3)                        # lane-dense (TB, A_pad) f32 store


def prepare_actor_params(w1, b1, w2, b2, w3, b3):
    """Pad feature dims to 128 lanes and cast weights to bf16 ONCE (reuse per call).

    Weights are stored [in, out] for `x @ W`. w1 keeps its K dim == state_dim
    (unpadded) because x's feature dim is not padded either. Padded rows/cols are
    exactly zero, so the valid output slice is unchanged.
    """
    S, H = w1.shape
    A = w3.shape[1]
    H_p = _round_up(H, LANE)
    A_p = _round_up(A, LANE)
    bf16, f32 = jnp.bfloat16, jnp.float32

    w1_p = jnp.zeros((S, H_p), bf16).at[:, :H].set(w1.astype(bf16))
    b1_p = jnp.zeros((1, H_p), f32).at[:, :H].set(b1.astype(f32).reshape(1, H))
    w2_p = jnp.zeros((H_p, H_p), bf16).at[:H, :H].set(w2.astype(bf16))
    b2_p = jnp.zeros((1, H_p), f32).at[:, :H].set(b2.astype(f32).reshape(1, H))
    w3_p = jnp.zeros((H_p, A_p), bf16).at[:H, :A].set(w3.astype(bf16))
    b3_p = jnp.zeros((1, A_p), f32).at[:, :A].set(b3.astype(f32).reshape(1, A))
    return (w1_p, b1_p, w2_p, b2_p, w3_p, b3_p)


def _pick_batch_tile(b8, num_cores):
    """b8: batch rounded up to 8 sublanes. Returns a batch tile (multiple of 8)."""
    max_tb = 1024                       # f32 intermediates per step stay << VMEM
    if b8 <= SUBLANE:
        return b8
    if b8 <= max_tb:
        if num_cores > 1 and b8 >= 2 * SUBLANE:
            # >= 2 grid steps so ("parallel",) shards the batch over both TCs (v7x).
            return _round_up(pl.cdiv(b8, 2), SUBLANE)
        return b8                       # single TC (v5e/v6e): one big step
    # Large batch: biggest candidate that minimizes last-tile zero padding.
    candidates = (256, 512, 1024)
    return min(candidates, key=lambda t: (_round_up(b8, t) - b8, -t))


@functools.partial(jax.jit, static_argnames=("action_dim", "tb", "bf16_relu"))
def _actor_forward_impl(state, w1_p, b1_p, w2_p, b2_p, w3_p, b3_p, *,
                        action_dim, tb, bf16_relu):
    B, S = state.shape
    H_p = w2_p.shape[0]
    A_p = w3_p.shape[1]
    B_p = _round_up(B, tb)              # pad only to the next needed multiple of tb

    # Ship x as bf16 (halves the DMA); feature dim stays unpadded (K = S).
    x = state.astype(jnp.bfloat16)
    if B_p != B:
        x = jnp.zeros((B_p, S), jnp.bfloat16).at[:B].set(x)

    grid = (B_p // tb,)

    def resident(shape):
        # Same block every grid step -> fetched once, stays VMEM-resident.
        return pl.BlockSpec(shape, lambda i, _n=len(shape): (0,) * _n)

    flops = 2 * B_p * (S * H_p + H_p * H_p + H_p * A_p)
    bytes_accessed = (x.size * 2 + B_p * A_p * 4
                      + (w1_p.size + w2_p.size + w3_p.size) * 2
                      + (b1_p.size + b2_p.size + b3_p.size) * 4)

    out = pl.pallas_call(
        functools.partial(_actor_kernel, bf16_relu=bf16_relu),
        out_shape=jax.ShapeDtypeStruct((B_p, A_p), jnp.float32),
        grid=grid,
        in_specs=[
            pl.BlockSpec((tb, S), lambda i: (i, 0)),   # last dim == full array dim
            resident((S, H_p)), resident((1, H_p)),
            resident((H_p, H_p)), resident((1, H_p)),
            resident((H_p, A_p)), resident((1, A_p)),
        ],
        out_specs=pl.BlockSpec((tb, A_p), lambda i: (i, 0)),
        compiler_params=pltpu.CompilerParams(
            dimension_semantics=("parallel",),
            vmem_limit_bytes=32 * 1024 * 1024,
        ),
        cost_estimate=pl.CostEstimate(
            flops=flops, transcendentals=B_p * A_p, bytes_accessed=bytes_accessed),
    )(x, w1_p, b1_p, w2_p, b2_p, w3_p, b3_p)

    # NOTE: consumers able to read the padded (B_p, A_p) buffer should do so and
    # skip this slice-copy; it is kept to preserve the (B, action_dim) API.
    return out[:B, :action_dim]


def actor_forward(state, params, action_dim):
    """state: (B, state_dim) f32; params: output of prepare_actor_params()."""
    num_cores, bf16_vpu = _tpu_flavor()
    b8 = _round_up(state.shape[0], SUBLANE)
    tb = _pick_batch_tile(b8, num_cores)
    return _actor_forward_impl(state, *params,
                               action_dim=action_dim, tb=tb, bf16_relu=bf16_vpu)


def init_linear(key, fan_in, fan_out):
    # Mimic torch.nn.Linear default init: U(-1/sqrt(fan_in), 1/sqrt(fan_in)).
    kw, kb = jax.random.split(key)
    bound = 1.0 / jnp.sqrt(jnp.float32(fan_in))
    # Stored as [in, out] (transposed vs. torch's [out, in]) for x @ W.
    w = jax.random.uniform(kw, (fan_in, fan_out), jnp.float32, -bound, bound)
    b = jax.random.uniform(kb, (fan_out,), jnp.float32, -bound, bound)
    return w, b


if __name__ == "__main__":
    # Small, TPU-friendly shapes consistent with the module's forward.
    B = 8                 # batch of states
    STATE_DIM = 16        # space_states_dim
    HIDDEN = 32           # hidden_dim (scaled down from default 300)
    ACTION_DIM = 8        # space_actions_dim

    key = jax.random.PRNGKey(0)
    kx, k1, k2, k3 = jax.random.split(key, 4)

    state = jax.random.normal(kx, (B, STATE_DIM), jnp.float32)
    w1, b1 = init_linear(k1, STATE_DIM, HIDDEN)
    w2, b2 = init_linear(k2, HIDDEN, HIDDEN)
    w3, b3 = init_linear(k3, HIDDEN, ACTION_DIM)

    # Pad / bf16-cast the weights ONCE; reused by every forward call.
    params = prepare_actor_params(w1, b1, w2, b2, w3, b3)

    actions = actor_forward(state, params, ACTION_DIM)
    jax.block_until_ready(actions)
    assert actions.shape == (B, ACTION_DIM)

    # Tight check vs a reference using the same bf16-in / f32-accumulate numerics.
    bf = jnp.bfloat16
    h1 = jnp.maximum(jnp.dot(state.astype(bf), w1.astype(bf),
                             preferred_element_type=jnp.float32) + b1, 0.0)
    h2 = jnp.maximum(jnp.dot(h1.astype(bf), w2.astype(bf),
                             preferred_element_type=jnp.float32) + b2, 0.0)
    ref_bf16 = jnp.tanh(jnp.dot(h2.astype(bf), w3.astype(bf),
                                preferred_element_type=jnp.float32) + b3)
    assert jnp.allclose(actions, ref_bf16, atol=1e-4, rtol=1e-4)

    # Loose check vs the pure-f32 PyTorch-equivalent forward (bf16 weight quant).
    h1f = jnp.maximum(state @ w1 + b1, 0.0)
    h2f = jnp.maximum(h1f @ w2 + b2, 0.0)
    ref_f32 = jnp.tanh(h2f @ w3 + b3)
    assert jnp.allclose(actions, ref_f32, atol=2e-2, rtol=2e-2)

    print("KERNEL_OK")
</pallas_src>

<mosaic_0001>
module attributes {stable_mosaic.version = 11 : i64} {
  func.func @_actor_kernel(%arg0: i32, %arg1: memref<8x16xbf16, #tpu.memory_space<vmem>>, %arg2: memref<16x128xbf16, #tpu.memory_space<vmem>>, %arg3: memref<1x128xf32, #tpu.memory_space<vmem>>, %arg4: memref<128x128xbf16, #tpu.memory_space<vmem>>, %arg5: memref<1x128xf32, #tpu.memory_space<vmem>>, %arg6: memref<128x128xbf16, #tpu.memory_space<vmem>>, %arg7: memref<1x128xf32, #tpu.memory_space<vmem>>, %arg8: memref<8x128xf32, #tpu.memory_space<vmem>>) attributes {dimension_semantics = [#tpu.dimension_semantics<parallel>], iteration_bounds = array<i64: 1>, scalar_prefetch = 0 : i64, scratch_operands = 0 : i64, tpu.core_type = #tpu.core_type<tc>, window_params = [{transform_indices = @transform_0, window_bounds = array<i64: 8, 16>}, {pipeline_mode = #tpu.pipeline_mode<synchronous>, transform_indices = @transform_1, window_bounds = array<i64: 16, 128>}, {pipeline_mode = #tpu.pipeline_mode<synchronous>, transform_indices = @transform_2, window_bounds = array<i64: 1, 128>}, {pipeline_mode = #tpu.pipeline_mode<synchronous>, transform_indices = @transform_3, window_bounds = array<i64: 128, 128>}, {pipeline_mode = #tpu.pipeline_mode<synchronous>, transform_indices = @transform_4, window_bounds = array<i64: 1, 128>}, {pipeline_mode = #tpu.pipeline_mode<synchronous>, transform_indices = @transform_5, window_bounds = array<i64: 128, 128>}, {pipeline_mode = #tpu.pipeline_mode<synchronous>, transform_indices = @transform_6, window_bounds = array<i64: 1, 128>}, {transform_indices = @transform_7, window_bounds = array<i64: 8, 128>}]} {
    %c0 = arith.constant 0 : index
    %c0_0 = arith.constant 0 : index
    %0 = vector.load %arg1[%c0, %c0_0] : memref<8x16xbf16, #tpu.memory_space<vmem>>, vector<8x16xbf16>
    %c0_1 = arith.constant 0 : index
    %c0_2 = arith.constant 0 : index
    %1 = vector.load %arg2[%c0_1, %c0_2] : memref<16x128xbf16, #tpu.memory_space<vmem>>, vector<16x128xbf16>
    %cst = arith.constant dense<0.000000e+00> : vector<8x128xf32>
    %2 = tpu.matmul %0, %1, %cst {dimension_numbers = #tpu.dot_dimension_numbers<[1], [0], [0], [1], [0, 0, 1, 1], [], []>} : vector<8x16xbf16>, vector<16x128xbf16>, vector<8x128xf32> -> vector<8x128xf32>
    %c0_3 = arith.constant 0 : index
    %c0_4 = arith.constant 0 : index
    %3 = vector.load %arg3[%c0_3, %c0_4] : memref<1x128xf32, #tpu.memory_space<vmem>>, vector<1x128xf32>
    %4 = vector.broadcast %3 : vector<1x128xf32> to vector<8x128xf32>
    %5 = arith.addf %2, %4 : vector<8x128xf32>
    %cst_5 = arith.constant 0.000000e+00 : f32
    %6 = vector.broadcast %cst_5 : f32 to vector<8x128xf32>
    %7 = arith.maximumf %5, %6 : vector<8x128xf32>
    %8 = arith.truncf %7 : vector<8x128xf32> to vector<8x128xbf16>
    %c0_6 = arith.constant 0 : index
    %c0_7 = arith.constant 0 : index
    %9 = vector.load %arg4[%c0_6, %c0_7] : memref<128x128xbf16, #tpu.memory_space<vmem>>, vector<128x128xbf16>
    %cst_8 = arith.constant dense<0.000000e+00> : vector<8x128xf32>
    %10 = tpu.matmul %8, %9, %cst_8 {dimension_numbers = #tpu.dot_dimension_numbers<[1], [0], [0], [1], [0, 0, 1, 1], [], []>} : vector<8x128xbf16>, vector<128x128xbf16>, vector<8x128xf32> -> vector<8x128xf32>
    %c0_9 = arith.constant 0 : index
    %c0_10 = arith.constant 0 : index
    %11 = vector.load %arg5[%c0_9, %c0_10] : memref<1x128xf32, #tpu.memory_space<vmem>>, vector<1x128xf32>
    %12 = vector.broadcast %11 : vector<1x128xf32> to vector<8x128xf32>
    %13 = arith.addf %10, %12 : vector<8x128xf32>
    %cst_11 = arith.constant 0.000000e+00 : f32
    %14 = vector.broadcast %cst_11 : f32 to vector<8x128xf32>
    %15 = arith.maximumf %13, %14 : vector<8x128xf32>
    %16 = arith.truncf %15 : vector<8x128xf32> to vector<8x128xbf16>
    %c0_12 = arith.constant 0 : index
    %c0_13 = arith.constant 0 : index
    %17 = vector.load %arg6[%c0_12, %c0_13] : memref<128x128xbf16, #tpu.memory_space<vmem>>, vector<128x128xbf16>
    %cst_14 = arith.constant dense<0.000000e+00> : vector<8x128xf32>
    %18 = tpu.matmul %16, %17, %cst_14 {dimension_numbers = #tpu.dot_dimension_numbers<[1], [0], [0], [1], [0, 0, 1, 1], [], []>} : vector<8x128xbf16>, vector<128x128xbf16>, vector<8x128xf32> -> vector<8x128xf32>
    %c0_15 = arith.constant 0 : index
    %c0_16 = arith.constant 0 : index
    %19 = vector.load %arg7[%c0_15, %c0_16] : memref<1x128xf32, #tpu.memory_space<vmem>>, vector<1x128xf32>
    %20 = vector.broadcast %19 : vector<1x128xf32> to vector<8x128xf32>
    %21 = arith.addf %18, %20 : vector<8x128xf32>
    %22 = math.tanh %21 : vector<8x128xf32>
    %c0_17 = arith.constant 0 : index
    %c0_18 = arith.constant 0 : index
    %23 = vector.load %arg8[%c0_17, %c0_18] : memref<8x128xf32, #tpu.memory_space<vmem>>, vector<8x128xf32>
    tpu.vector_store %arg8[%c0_17, %c0_18], %22 {strides = array<i32>} : memref<8x128xf32, #tpu.memory_space<vmem>>, vector<8x128xf32>,
    return
  }
  func.func @transform_0(%arg0: i32) -> (i32, i32) {
    %c0_i32 = arith.constant 0 : i32
    %c0_i32_0 = arith.constant 0 : i32
    return %arg0, %c0_i32 : i32, i32
  }
  func.func @transform_1(%arg0: i32) -> (i32, i32) {
    %c0_i32 = arith.constant 0 : i32
    %c0_i32_0 = arith.constant 0 : i32
    %c0_i32_1 = arith.constant 0 : i32
    return %c0_i32, %c0_i32_0 : i32, i32
  }
  func.func @transform_2(%arg0: i32) -> (i32, i32) {
    %c0_i32 = arith.constant 0 : i32
    %c0_i32_0 = arith.constant 0 : i32
    %c0_i32_1 = arith.constant 0 : i32
    return %c0_i32, %c0_i32_0 : i32, i32
  }
  func.func @transform_3(%arg0: i32) -> (i32, i32) {
    %c0_i32 = arith.constant 0 : i32
    %c0_i32_0 = arith.constant 0 : i32
    %c0_i32_1 = arith.constant 0 : i32
    return %c0_i32, %c0_i32_0 : i32, i32
  }
  func.func @transform_4(%arg0: i32) -> (i32, i32) {
    %c0_i32 = arith.constant 0 : i32
    %c0_i32_0 = arith.constant 0 : i32
    %c0_i32_1 = arith.constant 0 : i32
    return %c0_i32, %c0_i32_0 : i32, i32
  }
  func.func @transform_5(%arg0: i32) -> (i32, i32) {
    %c0_i32 = arith.constant 0 : i32
    %c0_i32_0 = arith.constant 0 : i32
    %c0_i32_1 = arith.constant 0 : i32
    return %c0_i32, %c0_i32_0 : i32, i32
  }
  func.func @transform_6(%arg0: i32) -> (i32, i32) {
    %c0_i32 = arith.constant 0 : i32
    %c0_i32_0 = arith.constant 0 : i32
    %c0_i32_1 = arith.constant 0 : i32
    return %c0_i32, %c0_i32_0 : i32, i32
  }
  func.func @transform_7(%arg0: i32) -> (i32, i32) {
    %c0_i32 = arith.constant 0 : i32
    %c0_i32_0 = arith.constant 0 : i32
    return %arg0, %c0_i32 : i32, i32
  }
}

</mosaic_0001>

<bundles_post_ra>
// kernel: _actor_forward_impl.1
= control target key start
LH: loop header
LB: loop body
LE: loop exit
PB: predicated region body
PF: predicated region fallthrough
CT: control target
= control target key end

     0   :  { %12 = vsyncpa [#allocation3], 0  ;;  %s663_s0 = inlined_call_operand.vmem [shape: bf16[8,16], index: 0, kind: input, shape index: {}]   ;;  %s664_s1 = inlined_call_operand.vmem [shape: bf16[16,128], index: 1, kind: input, shape index: {}]   ;;  %s665_s2 = inlined_call_operand.vmem [shape: f32[1,128], index: 2, kind: input, shape index: {}]   ;;  %s666_s3 = inlined_call_operand.hbm [shape: bf16[128,128], index: 3, kind: input, shape index: {}]   ;;  %s667_s4 = inlined_call_operand.vmem [shape: f32[1,128], index: 4, kind: input, shape index: {}]   ;;  %s668_s5 = inlined_call_operand.hbm [shape: bf16[128,128], index: 5, kind: input, shape index: {}]   ;;  %s669_s6 = inlined_call_operand.vmem [shape: f32[1,128], index: 6, kind: input, shape index: {}]   ;;  %s670_s7 = inlined_call_operand.hbm [shape: f32[8,128], index: 7, kind: output, shape index: {}]  }
   0x1   :  { %13 = vsyncpa [#allocation6], 0 }
   0x2   :  { %14 = vsyncpa [#allocation4], 0  ;;  %s545_s24 = smov [#allocation2]   ;;  %s473_s28 = scalar_lea.hbm %s666_s3, 1024 }
   0x3   :  { %s26_s25 = sshll.u32 %s545_s24, 4  ;;  %p474_p0 = scmp.ne.s32.totalorder %s666_s3, %s473_s28  ;;  %s27_s25 = int_to_ptr.vmem [resolvable:$true] %s26_s25 }
   0x4   :  { %p477_p1 = scmp.lt.u32.totalorder %s473_s28, %s666_s3 }
   0x6   :  { %p479_p2 = pnand %p477_p1, %p474_p0 }
   0x8   :  { %482 = shalt.err (!%p479_p2)
}
   0x9   :  { %s483_s10 = scalar_lea.vmem %s27_s25, 1024  ;;  %p488_p4 = scmp.lt.s32.totalorder %s27_s25, %s27_s25 }
   0xa   :  { %p484_p3 = scmp.ne.s32.totalorder %s27_s25, %s483_s10  ;;  %p489_p5 = scmp.lt.s32.totalorder %s483_s10, %s483_s10 }
   0xc   :  { %p490_p6 = por %p489_p5, %p488_p4 }
   0xe   :  { %p491_p7 = pnand %p490_p6, %p484_p3 }
  0x10   :  { %494 = shalt.err (!%p491_p7)
}
  0x11   :  { %s546_s11 = smov 64   ;;  %s547_s12 = smov 4  }
  0x12   :  { %32 = dma.hbm_to_vmem [thread:$0]  %s666_s3, 1024, %s27_s25, [#allocation3], %s546_s11, %s546_s11, %s547_s12  }
  0x13   :  { %s548_s15 = smov [#allocation5]   ;;  %s495_s19 = scalar_lea.hbm %s668_s5, 1024 }
  0x14   :  { %s40_s16 = sshll.u32 %s548_s15, 4  ;;  %p496_p8 = scmp.ne.s32.totalorder %s668_s5, %s495_s19  ;;  %s41_s16 = int_to_ptr.vmem [resolvable:$true] %s40_s16 }
  0x15   :  { %p499_p9 = scmp.lt.u32.totalorder %s495_s19, %s668_s5 }
  0x17   :  { %p501_p10 = pnand %p499_p9, %p496_p8 }
  0x19   :  { %504 = shalt.err (!%p501_p10)
}
  0x1a   :  { %s505_s24 = scalar_lea.vmem %s41_s16, 1024  ;;  %p510_p12 = scmp.lt.s32.totalorder %s41_s16, %s41_s16 }
  0x1b   :  { %p506_p11 = scmp.ne.s32.totalorder %s41_s16, %s505_s24  ;;  %p511_p13 = scmp.lt.s32.totalorder %s505_s24, %s505_s24 }
  0x1d   :  { %p512_p0 = por %p511_p13, %p510_p12 }
  0x1f   :  { %p513_p1 = pnand %p512_p0, %p506_p11 }
  0x21   :  { %516 = shalt.err (!%p513_p1)
}
  0x22   :  { %46 = dma.hbm_to_vmem [thread:$0]  %s668_s5, 1024, %s41_s16, [#allocation6], %s546_s11, %s546_s11, %s547_s12  }
  0x23   :  { %539 = dma.done.wait [#allocation3], 1024  }
  0x24   :  { %540 = vsyncadd [#allocation3], 4294966272 }
  0x25   :  { %541 = dma.done.wait [#allocation6], 1024  }
  0x26   :  { %542 = vsyncadd [#allocation6], 4294966272  ;;  %v549_v0 = vmov 0.0   ;;  %vm550_vm0 = vmmov 0   ;;  %v454_v1 = vld [vmem:[%s664_s1] sm:$0xff]   ;;  %vm72_vm1 = vcmask 130048  }
  0x27   :  { %401 = vmatprep.subr.bf16.mxu0 %v549_v0  ;;  %403 = vmatprep.mubr.msk.bf16.mxu0 %vm550_vm0, %v549_v0  ;;  %v56_v2 = vld [vmem:[%s663_s0] sm:$0xf]  ;;  %v455_v3 = vld [vmem:[#allocation2] sm:$0xff]   ;;  %v456_v4 = vld [vmem:[#allocation2 + $0x8] sm:$0xff]   ;;  %s551_s9 = smov [#allocation7]  }
  0x28   :  { %407 = vmatprep.subr.bf16.mxu1 %v549_v0  ;;  %423 = vmatprep.mubr.msk.bf16.mxu1 %vm550_vm0, %v549_v0  ;;  %v457_v5 = vld [vmem:[#allocation2 + $0x10] sm:$0xff]   ;;  %v458_v6 = vld [vmem:[#allocation2 + $0x18] sm:$0xff]   ;;  %v459_v7 = vld [vmem:[#allocation2 + $0x20] sm:$0xff]  }
  0x29   :  { %402 = vmatpush3.bf16.msra.mxu0 %v454_v1  ;;  %408 = vmatpush3.bf16.msra.mxu1 %v455_v3  ;;  %v460_v8 = vld [vmem:[#allocation2 + $0x28] sm:$0xff]   ;;  %v461_v9 = vld [vmem:[#allocation2 + $0x30] sm:$0xff]   ;;  %v462_v10 = vld [vmem:[#allocation2 + $0x38] sm:$0xff]  }
  0x2a   :  { %427 = vmatprep.subr.bf16.mxu0 %v549_v0  ;;  %409 = vmatprep.subr.bf16.mxu1 %v549_v0  ;;  %v463_v11 = vld [vmem:[#allocation5] sm:$0xff]   ;;  %v464_v12 = vld [vmem:[#allocation5 + $0x8] sm:$0xff]   ;;  %v465_v13 = vld [vmem:[#allocation5 + $0x10] sm:$0xff]  }
  0x2b   :  { %v466_v14 = vld [vmem:[#allocation5 + $0x18] sm:$0xff]   ;;  %v467_v15 = vld [vmem:[#allocation5 + $0x20] sm:$0xff]   ;;  %v468_v16 = vld [vmem:[#allocation5 + $0x28] sm:$0xff]  }
  0x2c   :  { %404 = vmatmul.mubr.msk.bf16.vlgmr.msra.gmra.mrb[0].mxu0 %vm72_vm1, %v56_v2  ;;  %v360_v17 = vld [vmem:[%s665_s2] ss:$0 sm:$0xff]  ;;  %v470_v26 = vld [vmem:[#allocation5 + $0x38] sm:$0xff]  }
  0x2d   :  { %443 = vmatprep.mubr.msk.bf16.mxu0 %vm550_vm0, %v549_v0  ;;  %410 = vmatpush3.bf16.msra.mxu1 %v456_v4  ;;  %v469_v25 = vld [vmem:[#allocation5 + $0x30] sm:$0xff]  }
  0x2e   :  { %411 = vmatprep.subr.bf16.mxu1 %v549_v0  ;;  %428 = vmatpush3.bf16.msra.mxu0 %v463_v11  ;;  %v363_v27 = vld [vmem:[%s667_s4] ss:$0 sm:$0xff]  ;;  %s350_s4 = sshll.u32 %s551_s9, 4  ;;  %s351_s4 = int_to_ptr.vmem [resolvable:$true] %s350_s4 }
  0x2f   :  { %429 = vmatprep.subr.bf16.mxu0 %v549_v0  ;;  %v372_v35 = vld [vmem:[%s669_s6] ss:$0 sm:$0xff]  ;;  %s517_s10 = scalar_lea.vmem %s351_s4, 128  ;;  %p522_p3 = scmp.lt.s32.totalorder %s351_s4, %s351_s4 }
  0x30   :  { %p518_p2 = scmp.ne.s32.totalorder %s351_s4, %s517_s10  ;;  %p523_p4 = scmp.lt.s32.totalorder %s517_s10, %s517_s10 }
  0x31   :  { %412 = vmatpush3.bf16.msra.mxu1 %v457_v5 }
  0x32   :  { %413 = vmatprep.subr.bf16.mxu1 %v549_v0  ;;  %430 = vmatpush3.bf16.msra.mxu0 %v464_v12  ;;  %p524_p5 = por %p523_p4, %p522_p3 }
  0x33   :  { %431 = vmatprep.subr.bf16.mxu0 %v549_v0 }
  0x34   :  { %p525_p6 = pnand %p524_p5, %p518_p2 }
  0x35   :  { %414 = vmatpush3.bf16.msra.mxu1 %v458_v6 }
  0x36   :  { %415 = vmatprep.subr.bf16.mxu1 %v549_v0  ;;  %432 = vmatpush3.bf16.msra.mxu0 %v465_v13 }
  0x37   :  { %433 = vmatprep.subr.bf16.mxu0 %v549_v0 }
  0x39   :  { %416 = vmatpush3.bf16.msra.mxu1 %v459_v7 }
  0x3a   :  { %417 = vmatprep.subr.bf16.mxu1 %v549_v0  ;;  %434 = vmatpush3.bf16.msra.mxu0 %v466_v14 }
  0x3b   :  { %435 = vmatprep.subr.bf16.mxu0 %v549_v0 }
  0x3d   :  { %418 = vmatpush3.bf16.msra.mxu1 %v460_v8 }
  0x3e   :  { %419 = vmatprep.subr.bf16.mxu1 %v549_v0  ;;  %436 = vmatpush3.bf16.msra.mxu0 %v467_v15 }
  0x3f   :  { %437 = vmatprep.subr.bf16.mxu0 %v549_v0 }
  0x41   :  { %420 = vmatpush3.bf16.msra.mxu1 %v461_v9 }
  0x42   :  { %421 = vmatprep.subr.bf16.mxu1 %v549_v0  ;;  %438 = vmatpush3.bf16.msra.mxu0 %v468_v16 }
  0x43   :  { %439 = vmatprep.subr.bf16.mxu0 %v549_v0 }
  0x45   :  { %422 = vmatpush3.bf16.msra.mxu1 %v462_v10 }
  0x46   :  { %440 = vmatpush3.bf16.msra.mxu0 %v469_v25 }
  0x47   :  { %441 = vmatprep.subr.bf16.mxu0 %v549_v0 }
  0x4a   :  { %442 = vmatpush3.bf16.msra.mxu0 %v470_v26 }
  0xff   :  { %v110_v18 = vpop.f32.mrb[0].mxu0 }
 0x100   :  { %v111_v19 = vadd.f32 %v360_v17, %v110_v18  ;;  %v405_v20 = vpop.f32.mrb[1].mxu0 }
 0x101   :  { %v113_v21 = vpop.f32.mrb[2].mxu0 }
 0x102   :  { %v116_v22 = vmax.f32 %v111_v19, 0.0  ;;  %v406_v23 = vpop.f32.mrb[3].mxu0 }
 0x104   :  { %v117_v24 = vpack.c.bf16 %v116_v22, %v116_v22 }
 0x106   :  { %424 = vmatmul.mubr.bf16.vlgmr.msra.gmra.mrb[0].mxu1 %v117_v24 }
 0x1d9   :  { %v223_v28 = vpop.f32.mrb[0].mxu1 }
 0x1da   :  { %v224_v29 = vadd.f32 %v363_v27, %v223_v28  ;;  %v425_v30 = vpop.f32.mrb[1].mxu1 }
 0x1db   :  { %v226_v31 = vpop.f32.mrb[2].mxu1 }
 0x1dc   :  { %v229_v32 = vmax.f32 %v224_v29, 0.0  ;;  %v426_v33 = vpop.f32.mrb[3].mxu1 }
 0x1de   :  { %v230_v34 = vpack.c.bf16 %v229_v32, %v229_v32 }
 0x1e0   :  { %444 = vmatmul.mubr.bf16.vlgmr.msra.gmra.mrb[4].mxu0 %v230_v34 }
 0x2b3   :  { %v336_v36 = vpop.f32.mrb[4].mxu0 }
 0x2b4   :  { %v337_v37 = vadd.f32 %v372_v35, %v336_v36  ;;  %v445_v38 = vpop.f32.mrb[5].mxu0 }
 0x2b5   :  { %v339_v39 = vpop.f32.mrb[6].mxu0 }
 0x2b6   :  { %471 = vtanh.f32 %v337_v37  ;;  %v446_v40 = vpop.f32.mrb[7].mxu0 }
 0x2c0   :  { %v472_v41 = vpop.eup %471 }
 0x2c1   :  { %343 = vst [vmem:[#allocation7] sm:$0xff] %v472_v41 }
 0x2c2   :  { %528 = shalt.err (!%p525_p6)
}
 0x2c3   :  { %s529_s12 = scalar_lea.hbm %s670_s7, 128 }
 0x2c4   :  { %p530_p7 = scmp.ne.s32.totalorder %s670_s7, %s529_s12  ;;  %p533_p8 = scmp.lt.u32.totalorder %s529_s12, %s670_s7 }
 0x2c6   :  { %p535_p9 = pnand %p533_p8, %p530_p7 }
 0x2c8   :  { %538 = shalt.err (!%p535_p9)
}
 0x2c9   :  { %353 = dma.vmem_to_hbm [thread:$0]  %s351_s4, 128, %s670_s7, [#allocation4]  }
 0x2ca   :  { %543 = dma.done.wait [#allocation4], 128  }
 0x2cb   :  { %544 = vsyncadd [#allocation4], 4294967168 }
 0x2cc   :  { %357 = vsyncpa [#allocation3], 1 }
 0x2cd   :  { %358 = vsyncpa [#allocation6], 1 }
 0x2ce   :  { %359 = vsyncpa [#allocation4], 1 }

</bundles_post_ra>
